<compile_context>
chip_gen: v6e
topology: v6e:2x2x1
jax: 0.10.0
libtpu: 0.0.40
codegen_flags: <defaults>
</compile_context>

<pallas_src>
import functools

import jax
import jax.numpy as jnp
import numpy as np
from jax.experimental import pallas as pl
from jax.experimental.pallas import tpu as pltpu

LANE = 128
SUBLANE = 8
CHUNK_ROWS = 64             # strip-mine chunk: (64,128) f32 = 8 vregs each for xn / acc
BLOCK_ROWS_MAX = 1024       # (1024,128) f32 block = 512 KiB; in+out double-buffered ~2 MiB
TARGET_GRID_STEPS = 8       # keep >= 8 pipelined grid steps before growing block size
UNROLL_MAX_SEGMENTS = 128   # bake + fully unroll the per-segment chain up to this count


def _round_up(a: int, b: int) -> int:
    return (a + b - 1) // b * b


def _spline_kernel_baked(x_ref, o_ref, *, chunk_rows, n_chunks, ramps, steps, y0):
    """Per-segment tables baked as Python constants; compute strip-mined into
    register-resident (chunk_rows, 128) sub-tiles of the large DMA block."""

    def compute(xn):
        acc = jnp.full(xn.shape, jnp.float32(y0), jnp.float32)
        for xk, slope, lo, hi in ramps:        # non-degenerate segments
            acc = acc + jnp.clip(slope * (xn - xk), lo, hi)
        for xk, dy in steps:                   # duplicate-x knots -> step discontinuity
            acc = acc + jnp.where(xn >= xk, jnp.float32(dy), jnp.float32(0.0))
        return acc

    if n_chunks == 1:
        o_ref[...] = compute(x_ref[...].astype(jnp.float32)).astype(o_ref.dtype)
    else:
        def body(c, carry):
            r = pl.multiple_of(c * chunk_rows, chunk_rows)
            xn = x_ref[pl.ds(r, chunk_rows), :].astype(jnp.float32)
            o_ref[pl.ds(r, chunk_rows), :] = compute(xn).astype(o_ref.dtype)
            return carry

        jax.lax.fori_loop(0, n_chunks, body, 0)


def _spline_kernel_tables(tbl_ref, x_ref, o_ref, *, chunk_rows, n_chunks,
                          n_ramp, n_step, y0):
    """Large-knot-count path: consolidated (5, n) f32 table in SMEM.
    Rows: 0 = x_k, 1 = slope, 2 = lo, 3 = hi, 4 = step dy. Ramps first, steps after."""

    def compute(xn):
        acc = jnp.full(xn.shape, jnp.float32(y0), jnp.float32)
        if n_ramp > 0:
            def ramp_body(k, a):
                t = tbl_ref[1, k] * (xn - tbl_ref[0, k])
                return a + jnp.clip(t, tbl_ref[2, k], tbl_ref[3, k])
            acc = jax.lax.fori_loop(0, n_ramp, ramp_body, acc, unroll=8)
        if n_step > 0:
            def step_body(k, a):
                return a + jnp.where(xn >= tbl_ref[0, k], tbl_ref[4, k],
                                     jnp.float32(0.0))
            acc = jax.lax.fori_loop(n_ramp, n_ramp + n_step, step_body, acc, unroll=4)
        return acc

    if n_chunks == 1:
        o_ref[...] = compute(x_ref[...].astype(jnp.float32)).astype(o_ref.dtype)
    else:
        def body(c, carry):
            r = pl.multiple_of(c * chunk_rows, chunk_rows)
            xn = x_ref[pl.ds(r, chunk_rows), :].astype(jnp.float32)
            o_ref[pl.ds(r, chunk_rows), :] = compute(xn).astype(o_ref.dtype)
            return carry

        jax.lax.fori_loop(0, n_chunks, body, 0)


class LinearSpline:
    """JAX/Pallas port of the PyTorch LinearSpline module (forward pass)."""

    def __init__(self, x: jnp.ndarray, y: jnp.ndarray):
        x = np.asarray(x, dtype=np.float32)
        y = np.asarray(y, dtype=np.float32)
        order = np.argsort(x, kind="stable")
        xs = x[order]
        ys = y[order]
        self.n_knots = int(xs.shape[-1])

        # Padded knot tables (same as torch __init__) — kept for the pure-JAX reference.
        self.px = jnp.asarray(np.concatenate([xs[:1], xs, xs[-1:]]))
        self.py = jnp.asarray(np.concatenate([ys[:1], ys, ys[-1:]]))

        # Reformulate as y0 + sum of clipped ramps (+ steps for duplicate-x knots).
        self.y0 = float(ys[0])
        ramps, steps = [], []
        for k in range(self.n_knots - 1):
            dx = float(xs[k + 1]) - float(xs[k])
            dy = float(ys[k + 1]) - float(ys[k])
            if dy == 0.0:
                continue                                 # contributes nothing
            if dx == 0.0:
                steps.append((float(xs[k]), dy))         # duplicate knot -> step of dy
            else:
                ramps.append((float(xs[k]), dy / dx, min(dy, 0.0), max(dy, 0.0)))
        self.ramps = tuple(ramps)
        self.steps = tuple(steps)
        self.n_active = len(ramps) + len(steps)

        if self.n_active > UNROLL_MAX_SEGMENTS:
            tbl = np.zeros((5, self.n_active), np.float32)
            for i, (xk, sl, lo, hi) in enumerate(ramps):
                tbl[0, i], tbl[1, i], tbl[2, i], tbl[3, i] = xk, sl, lo, hi
            for j, (xk, dy) in enumerate(steps):
                c = len(ramps) + j
                tbl[0, c], tbl[4, c] = xk, dy
            self.tables = jnp.asarray(tbl)
        else:
            self.tables = None

    def __call__(self, x_new: jnp.ndarray) -> jnp.ndarray:
        orig_shape = x_new.shape
        orig_dtype = x_new.dtype

        # Narrow float dtypes stay narrow through HBM (compute is f32 in-kernel).
        # Non-float / wide inputs are computed and returned as f32 (documented API
        # deviation from a strictly dtype-preserving port).
        if jnp.issubdtype(orig_dtype, jnp.floating) and jnp.dtype(orig_dtype).itemsize <= 4:
            io_dtype = orig_dtype
        else:
            io_dtype = jnp.float32
        itemsize = jnp.dtype(io_dtype).itemsize
        sublane = SUBLANE * (4 // itemsize)          # 8 rows f32, 16 rows bf16/f16

        flat = x_new.reshape(-1).astype(io_dtype)
        total = int(flat.shape[0])
        if total == 0:
            return jnp.zeros(orig_shape, io_dtype)

        # Only pad to a 128-lane multiple when misaligned (needed for the 2-D reshape).
        # Block-level raggedness is handled by Pallas partial-block masking, so the
        # common aligned case has no extra HBM copy at all.
        lane_total = _round_up(total, LANE)
        if lane_total != total:
            flat = jnp.pad(flat, (0, lane_total - total))
        x2d = flat.reshape(-1, LANE)
        rows = x2d.shape[0]

        # Block sizing: keep >= TARGET_GRID_STEPS pipelined grid steps (both v7x cores
        # get several steps, DMA overlaps compute) before growing blocks toward the cap.
        block_rows = _round_up(pl.cdiv(rows, TARGET_GRID_STEPS), sublane)
        block_rows = max(sublane, min(BLOCK_ROWS_MAX, block_rows))
        if block_rows > CHUNK_ROWS:
            block_rows = _round_up(block_rows, CHUNK_ROWS)
        grid = (pl.cdiv(rows, block_rows),)

        chunk_rows = min(CHUNK_ROWS, block_rows)
        n_chunks = block_rows // chunk_rows

        data_spec = pl.BlockSpec((block_rows, LANE), lambda i: (i, 0))
        params = pltpu.CompilerParams(dimension_semantics=("parallel",))

        if self.n_active <= UNROLL_MAX_SEGMENTS:
            kernel = functools.partial(
                _spline_kernel_baked, chunk_rows=chunk_rows, n_chunks=n_chunks,
                ramps=self.ramps, steps=self.steps, y0=self.y0)
            out2d = pl.pallas_call(
                kernel,
                out_shape=jax.ShapeDtypeStruct((rows, LANE), io_dtype),
                grid=grid,
                in_specs=[data_spec],
                out_specs=data_spec,
                compiler_params=params,
            )(x2d)
        else:
            # TODO(synk): the (5, n) table could move to scalar prefetch
            # (PrefetchScalarGridSpec) to avoid per-step SMEM copies; negligible here
            # since compute scales with n_active >> 128.
            kernel = functools.partial(
                _spline_kernel_tables, chunk_rows=chunk_rows, n_chunks=n_chunks,
                n_ramp=len(self.ramps), n_step=len(self.steps), y0=self.y0)
            out2d = pl.pallas_call(
                kernel,
                out_shape=jax.ShapeDtypeStruct((rows, LANE), io_dtype),
                grid=grid,
                in_specs=[pl.BlockSpec(memory_space=pltpu.MemorySpace.SMEM), data_spec],
                out_specs=data_spec,
                compiler_params=params,
            )(self.tables, x2d)

        out_flat = out2d.reshape(-1)
        if lane_total != total:
            out_flat = out_flat[:total]
        return out_flat.reshape(orig_shape)


def _reference(px, py, x_new):
    """Pure-JAX mirror of the torch forward (for correctness checking)."""
    xn = x_new.reshape(-1).astype(jnp.float32)
    i = jnp.searchsorted(px[1:-1], xn, side="right")
    x_left, x_right = px[i], px[i + 1]
    y_left, y_right = py[i], py[i + 1]
    w = jnp.where(x_left == x_right, 0.0, (xn - x_left) / (x_right - x_left))
    return (y_left + w * (y_right - y_left)).reshape(x_new.shape)


if __name__ == "__main__":
    key = jax.random.PRNGKey(0)
    k_x, k_y, k_new, k_new2, k_new3, k_new4 = jax.random.split(key, 6)

    # --- test 1: generic 8-knot spline, NCHW-like query batch (lane-aligned, 2 steps)
    n_knots = 8
    knot_x = jax.random.uniform(k_x, (n_knots,), jnp.float32, minval=-1.0, maxval=1.0)
    knot_y = jax.random.normal(k_y, (n_knots,), jnp.float32)
    spline = LinearSpline(knot_x, knot_y)
    x_new = jax.random.uniform(k_new, (2, 4, 16, 16), jnp.float32, minval=-1.5, maxval=1.5)
    out = spline(x_new)
    jax.block_until_ready(out)
    ref = _reference(spline.px, spline.py, x_new)
    np.testing.assert_allclose(np.asarray(out), np.asarray(ref), rtol=1e-5, atol=1e-5)

    # --- test 2: duplicate interior knot (step), exact-knot queries, ragged 105-elem
    #             total exercising the lane-pad path ---------------------------------
    dup_x = jnp.asarray([0.0, 0.5, 0.5, 1.0, 1.5], jnp.float32)
    dup_y = jnp.asarray([0.0, 1.0, -2.0, 3.0, 0.5], jnp.float32)
    spline2 = LinearSpline(dup_x, dup_y)
    q = jax.random.uniform(k_new2, (3, 5, 7), jnp.float32, minval=-0.5, maxval=2.0)
    q = q.at[0, 0, :5].set(jnp.asarray([0.0, 0.5, 1.0, 1.5, -1.0], jnp.float32))
    out2 = spline2(q)
    jax.block_until_ready(out2)
    ref2 = _reference(spline2.px, spline2.py, q)
    np.testing.assert_allclose(np.asarray(out2), np.asarray(ref2), rtol=1e-5, atol=1e-5)

    # --- test 3: bf16 I/O (narrow dtype through HBM, f32 compute in-kernel) ----------
    xb = x_new.astype(jnp.bfloat16)
    out3 = spline(xb)
    jax.block_until_ready(out3)
    assert out3.dtype == jnp.bfloat16
    ref3 = _reference(spline.px, spline.py, xb.astype(jnp.float32))
    np.testing.assert_allclose(np.asarray(out3, dtype=np.float32), np.asarray(ref3),
                               rtol=2e-2, atol=2e-2)

    # --- test 4: duplicate knots at BOTH extremes + exact endpoint / out-of-range
    #             queries (edge-clamp vs. step interaction) ---------------------------
    edge_x = jnp.asarray([0.0, 0.0, 0.5, 1.0, 1.0], jnp.float32)
    edge_y = jnp.asarray([1.0, 2.0, 0.0, -1.0, 3.0], jnp.float32)
    spline4 = LinearSpline(edge_x, edge_y)
    q4 = jnp.asarray([[-0.5, 0.0, 0.25, 0.5], [0.75, 1.0, 1.5, -2.0]], jnp.float32)
    out4 = spline4(q4)
    jax.block_until_ready(out4)
    ref4 = _reference(spline4.px, spline4.py, q4)
    np.testing.assert_allclose(np.asarray(out4), np.asarray(ref4), rtol=1e-5, atol=1e-5)

    # --- test 5: medium input exercising multi-chunk strip-mining, multi-step grid
    #             and a ragged last grid block without any jnp.pad (67584 % 128 == 0) -
    q5 = jax.random.uniform(k_new3, (4, 8, 64, 33), jnp.float32, minval=-2.0, maxval=2.0)
    out5 = spline(q5)
    jax.block_until_ready(out5)
    ref5 = _reference(spline.px, spline.py, q5)
    np.testing.assert_allclose(np.asarray(out5), np.asarray(ref5), rtol=1e-5, atol=1e-5)

    # --- test 6: large knot count (>128 active segments) -> SMEM-table fori path -----
    big_x = np.sort(np.asarray(jax.random.uniform(k_new4, (160,), jnp.float32,
                                                  minval=-2.0, maxval=2.0)))
    big_y = np.sin(3.0 * big_x).astype(np.float32)
    spline6 = LinearSpline(jnp.asarray(big_x), jnp.asarray(big_y))
    q6 = jax.random.uniform(k_new, (2, 3, 50), jnp.float32, minval=-2.5, maxval=2.5)
    out6 = spline6(q6)
    jax.block_until_ready(out6)
    ref6 = _reference(spline6.px, spline6.py, q6)
    np.testing.assert_allclose(np.asarray(out6), np.asarray(ref6), rtol=1e-4, atol=1e-4)

    print("KERNEL_OK")
</pallas_src>

<mosaic_0001>
module attributes {stable_mosaic.version = 11 : i64} {
  func.func @_spline_kernel_baked(%arg0: i32, %arg1: memref<8x128xf32, #tpu.memory_space<vmem>>, %arg2: memref<8x128xf32, #tpu.memory_space<vmem>>) attributes {dimension_semantics = [#tpu.dimension_semantics<parallel>], iteration_bounds = array<i64: 2>, scalar_prefetch = 0 : i64, scratch_operands = 0 : i64, tpu.core_type = #tpu.core_type<tc>, window_params = [{transform_indices = @transform_0, window_bounds = array<i64: 8, 128>}, {transform_indices = @transform_1, window_bounds = array<i64: 8, 128>}]} {
    %c0 = arith.constant 0 : index
    %c0_0 = arith.constant 0 : index
    %0 = vector.load %arg1[%c0, %c0_0] : memref<8x128xf32, #tpu.memory_space<vmem>>, vector<8x128xf32>
    %cst = arith.constant -0.353550196 : f32
    %1 = vector.broadcast %cst : f32 to vector<8x128xf32>
    %cst_1 = arith.constant -0.758548736 : f32
    %2 = vector.broadcast %cst_1 : f32 to vector<8x128xf32>
    %3 = arith.subf %0, %2 : vector<8x128xf32>
    %cst_2 = arith.constant 10.2266197 : f32
    %4 = vector.broadcast %cst_2 : f32 to vector<8x128xf32>
    %5 = arith.mulf %4, %3 : vector<8x128xf32>
    %cst_3 = arith.constant 0.000000e+00 : f32
    %cst_4 = arith.constant 0.650715947 : f32
    %6 = vector.broadcast %cst_3 : f32 to vector<8x128xf32>
    %7 = arith.maximumf %6, %5 : vector<8x128xf32>
    %8 = vector.broadcast %cst_4 : f32 to vector<8x128xf32>
    %9 = arith.minimumf %8, %7 : vector<8x128xf32>
    %10 = arith.addf %1, %9 : vector<8x128xf32>
    %cst_5 = arith.constant -0.694919109 : f32
    %11 = vector.broadcast %cst_5 : f32 to vector<8x128xf32>
    %12 = arith.subf %0, %11 : vector<8x128xf32>
    %cst_6 = arith.constant -3.909160e+01 : f32
    %13 = vector.broadcast %cst_6 : f32 to vector<8x128xf32>
    %14 = arith.mulf %13, %12 : vector<8x128xf32>
    %cst_7 = arith.constant -2.3328464 : f32
    %cst_8 = arith.constant 0.000000e+00 : f32
    %15 = vector.broadcast %cst_7 : f32 to vector<8x128xf32>
    %16 = arith.maximumf %15, %14 : vector<8x128xf32>
    %17 = vector.broadcast %cst_8 : f32 to vector<8x128xf32>
    %18 = arith.minimumf %17, %16 : vector<8x128xf32>
    %19 = arith.addf %10, %18 : vector<8x128xf32>
    %cst_9 = arith.constant -0.635242701 : f32
    %20 = vector.broadcast %cst_9 : f32 to vector<8x128xf32>
    %21 = arith.subf %0, %20 : vector<8x128xf32>
    %cst_10 = arith.constant 67.5003128 : f32
    %22 = vector.broadcast %cst_10 : f32 to vector<8x128xf32>
    %23 = arith.mulf %22, %21 : vector<8x128xf32>
    %cst_11 = arith.constant 0.000000e+00 : f32
    %cst_12 = arith.constant 1.27370644 : f32
    %24 = vector.broadcast %cst_11 : f32 to vector<8x128xf32>
    %25 = arith.maximumf %24, %23 : vector<8x128xf32>
    %26 = vector.broadcast %cst_12 : f32 to vector<8x128xf32>
    %27 = arith.minimumf %26, %25 : vector<8x128xf32>
    %28 = arith.addf %19, %27 : vector<8x128xf32>
    %cst_13 = arith.constant -0.616373062 : f32
    %29 = vector.broadcast %cst_13 : f32 to vector<8x128xf32>
    %30 = arith.subf %0, %29 : vector<8x128xf32>
    %cst_14 = arith.constant 13.6791811 : f32
    %31 = vector.broadcast %cst_14 : f32 to vector<8x128xf32>
    %32 = arith.mulf %31, %30 : vector<8x128xf32>
    %cst_15 = arith.constant 0.000000e+00 : f32
    %cst_16 = arith.constant 0.96751827 : f32
    %33 = vector.broadcast %cst_15 : f32 to vector<8x128xf32>
    %34 = arith.maximumf %33, %32 : vector<8x128xf32>
    %35 = vector.broadcast %cst_16 : f32 to vector<8x128xf32>
    %36 = arith.minimumf %35, %34 : vector<8x128xf32>
    %37 = arith.addf %28, %36 : vector<8x128xf32>
    %cst_17 = arith.constant -0.545643806 : f32
    %38 = vector.broadcast %cst_17 : f32 to vector<8x128xf32>
    %39 = arith.subf %0, %38 : vector<8x128xf32>
    %cst_18 = arith.constant -1.39853752 : f32
    %40 = vector.broadcast %cst_18 : f32 to vector<8x128xf32>
    %41 = arith.mulf %40, %39 : vector<8x128xf32>
    %cst_19 = arith.constant -1.38409603 : f32
    %cst_20 = arith.constant 0.000000e+00 : f32
    %42 = vector.broadcast %cst_19 : f32 to vector<8x128xf32>
    %43 = arith.maximumf %42, %41 : vector<8x128xf32>
    %44 = vector.broadcast %cst_20 : f32 to vector<8x128xf32>
    %45 = arith.minimumf %44, %43 : vector<8x128xf32>
    %46 = arith.addf %37, %45 : vector<8x128xf32>
    %cst_21 = arith.constant 0.444030046 : f32
    %47 = vector.broadcast %cst_21 : f32 to vector<8x128xf32>
    %48 = arith.subf %0, %47 : vector<8x128xf32>
    %cst_22 = arith.constant 0.349203438 : f32
    %49 = vector.broadcast %cst_22 : f32 to vector<8x128xf32>
    %50 = arith.mulf %49, %48 : vector<8x128xf32>
    %cst_23 = arith.constant 0.000000e+00 : f32
    %cst_24 = arith.constant 0.0303322077 : f32
    %51 = vector.broadcast %cst_23 : f32 to vector<8x128xf32>
    %52 = arith.maximumf %51, %50 : vector<8x128xf32>
    %53 = vector.broadcast %cst_24 : f32 to vector<8x128xf32>
    %54 = arith.minimumf %53, %52 : vector<8x128xf32>
    %55 = arith.addf %46, %54 : vector<8x128xf32>
    %cst_25 = arith.constant 0.53089118 : f32
    %56 = vector.broadcast %cst_25 : f32 to vector<8x128xf32>
    %57 = arith.subf %0, %56 : vector<8x128xf32>
    %cst_26 = arith.constant -8.41850471 : f32
    %58 = vector.broadcast %cst_26 : f32 to vector<8x128xf32>
    %59 = arith.mulf %58, %57 : vector<8x128xf32>
    %cst_27 = arith.constant -1.29423618 : f32
    %cst_28 = arith.constant 0.000000e+00 : f32
    %60 = vector.broadcast %cst_27 : f32 to vector<8x128xf32>
    %61 = arith.maximumf %60, %59 : vector<8x128xf32>
    %62 = vector.broadcast %cst_28 : f32 to vector<8x128xf32>
    %63 = arith.minimumf %62, %61 : vector<8x128xf32>
    %64 = arith.addf %55, %63 : vector<8x128xf32>
    %c0_29 = arith.constant 0 : index
    %c0_30 = arith.constant 0 : index
    %65 = vector.load %arg2[%c0_29, %c0_30] : memref<8x128xf32, #tpu.memory_space<vmem>>, vector<8x128xf32>
    tpu.vector_store %arg2[%c0_29, %c0_30], %64 {strides = array<i32>} : memref<8x128xf32, #tpu.memory_space<vmem>>, vector<8x128xf32>,
    return
  }
  func.func @transform_0(%arg0: i32) -> (i32, i32) {
    %c0_i32 = arith.constant 0 : i32
    %c0_i32_0 = arith.constant 0 : i32
    return %arg0, %c0_i32 : i32, i32
  }
  func.func @transform_1(%arg0: i32) -> (i32, i32) {
    %c0_i32 = arith.constant 0 : i32
    %c0_i32_0 = arith.constant 0 : i32
    return %arg0, %c0_i32 : i32, i32
  }
}

</mosaic_0001>

<bundles_post_ra>
// kernel: tpu_custom_call.1
= control target key start
LH: loop header
LB: loop body
LE: loop exit
PB: predicated region body
PF: predicated region fallthrough
CT: control target
= control target key end

     0   :  { %6 = vsyncpa [#allocation3], 0  ;;  %s569_s0 = inlined_call_operand.hbm [shape: f32[16,128], index: 0, kind: input, shape index: {}]   ;;  %s570_s1 = inlined_call_operand.hbm [shape: f32[16,128], index: 1, kind: output, shape index: {}]  }
   0x1   :  { %8 = vsyncpa [#allocation3 + $0x1], 0 }
   0x2   :  { %9 = vsyncpa [#allocation4], 0 }
   0x3   :  { %11 = vsyncpa [#allocation4 + $0x1], 0  ;;  %s424_s6 = smov 0   ;;  %s426_s7 = smov 0  }
   0x4   :  { %s428_s8 = smov 0   ;;  %s430_s9 = smov 0  }
   0x5 LB: > { %s445_s10 = sadd.s32 4294967295, %s410_s9   ;;  %s253_s11 = sadd.s32 4294967294, %s410_s9   ;;  %s410_s9 = sphi %s430_s9, %s587_s9   ;;  %s406_s8 = sphi %s428_s8, %s586_s8   ;;  %s402_s7 = sphi %s426_s7, %s585_s7   ;;  %s398_s6 = sphi %s424_s6, %s584_s6  }
   0x6   : > { %s449_s12 = sadd.s32 1, %s410_s9   ;;  %s24_s13 = sadd.s32 1, %s406_s8 }
   0x7   : > { %s21_s14 = ssub.s32 %s410_s9, %s449_s12  ;;  %p31_p0 = scmp.ne.s32.totalorder %s406_s8, %s402_s7 }
   0x8   : > { %p22_p1 = scmp.eq.s32.totalorder %s21_s14, 0  ;;  %p32_p2 = scmp.eq.s32.totalorder %s410_s9, 0 }
   0x9   : > { %p37_p3 = scmp.ne.s32.totalorder %s402_s7, %s398_s6  ;;  %p38_p4 = scmp.eq.s32.totalorder %s445_s10, 0 }
   0xa   : > { %s461_s15 = scalar_select %p22_p1, %s406_s8, %s24_s13  }
   0xb   : > { %p463_p5 = por %p32_p2, %p31_p0  ;;  %p467_p6 = por %p38_p4, %p37_p3 }
   0xc   : > { %p61_p7 = scmp.eq.s32.totalorder %s445_s10, 1  ;;  %p67_p8 = scmp.eq.s32.totalorder %s253_s11, 1 }
   0xd   : > { %s574_s17 = scalar_select %p467_p6, 1, 0 }
   0xe   : > { %p284_p10 = scmp.lt.s32.totalorder %s410_s9, 2  ;;  %p474_p11 = por %p61_p7, %p31_p0 }
   0xf   : > { %p478_p12 = por %p67_p8, %p37_p3  ;;  %s87_s20 = sand.u32 1, %s406_s8  }
  0x10   : > { %s575_s18 = scalar_select %p474_p11, 1, 0 }
  0x11   : > { %s576_s19 = scalar_select %p478_p12, 1, 0 }
  0x12   : > { %s257_s21 = sshll.u32 %s410_s9, 7  ;;  %s256_s22 = sshll.u32 %s87_s20, 3 }
  0x13   : > { %s487_s25 = scalar_lea.hbm %s569_s0, %s257_s21  ;;  %s91_s26 = scalar_lea.vmem [#allocation2], %s256_s22 }
  0x14   : > { %s98_s27 = sshll.u32 %s91_s26, 4  ;;  %p491_p13 = pnand %p284_p10, %p463_p5  ;;  %s495_s27 = int_to_ptr.vmem [resolvable:$true] %s98_s27 }
  0x15   : > { %s88_s29 = scalar_lea.sflag [#allocation3], %s87_s20  ;;  %s318_s30 = scalar_lea.hbm %s487_s25, 128 }
  0x16   : > { %p319_p2 = scmp.ne.s32.totalorder %s487_s25, %s318_s30  ;;  %p320_p3 = pneg %p491_p13 }
  0x17   : > { %s323_s4 = scalar_lea.hbm %s569_s0, 256  ;;  %p324_p5 = scmp.lt.s32.totalorder %s487_s25, %s569_s0 }
  0x18   : > { %p321_p4 = pnand %p320_p3, %p319_p2  ;;  %p325_p8 = scmp.lt.s32.totalorder %s323_s4, %s318_s30 }
  0x1a   : > { %p322_p7 = pneg %p321_p4  ;;  %p326_p10 = por %p325_p8, %p324_p5 }
  0x1c   : > { %p327_p9 = pnand %p326_p10, %p322_p7 }
  0x1e   : > { %330 = shalt.err (!%p327_p9)
}
  0x1f   : > { %s331_s13 = scalar_lea.vmem %s495_s27, 128  ;;  %s412_s14 = smov [#allocation2]  }
  0x20   : > { %p332_p0 = scmp.ne.s32.totalorder %s495_s27, %s331_s13  ;;  %s336_s16 = sshll.u32 %s412_s14, 4  ;;  %s337_s16 = int_to_ptr.vmem [resolvable:$false] %s336_s16 }
  0x21   : > { %s338_s20 = scalar_lea.vmem %s337_s16, 256  ;;  %p339_p4 = scmp.lt.s32.totalorder %s495_s27, %s337_s16 }
  0x22   : > { %p334_p1 = pnand %p332_p0, %p320_p3  ;;  %p340_p12 = scmp.lt.s32.totalorder %s338_s20, %s331_s13 }
  0x24   : > { %p335_p2 = pneg %p334_p1  ;;  %p341_p11 = por %p340_p12, %p339_p4 }
  0x26   : > { %p342_p6 = pnand %p341_p11, %p335_p2 }
  0x28   : > { %345 = shalt.err (!%p342_p6)
}
  0x29   : > { %279 = dma.hbm_to_vmem [thread:$0]  (!%p491_p13), %s487_s25, 128, %s495_s27, %s88_s29  }
  0x2a   : > { %p578_p9 = scmp.lt.s32.totalorder %s410_s9, 3  ;;  %p579_p7 = scmp.ge.s32.totalorder %s410_s9, 1 }
  0x2c   : > { %p104_p0 = pnand %p579_p7, %p578_p9 }
  0x2d   : > { %s522_s21 = sand.u32 (!%p104_p0), 1, %s402_s7   ;;  %p580_p6 = scmp.ne.s32.totalorder (!%p104_p0), %s574_s17, 0 }
  0x2e   : > { %107 = sbr.rel (%p104_p0) target bundleno = 88 (0x58), region = 24  ;;  %s259_s22 = sshll.u32 (!%p104_p0), %s522_s21, 3 }
  0x2f   : > { %s110_s23 = scalar_lea.sflag (!%p104_p0), [#allocation3], %s522_s21  ;;  %s113_s24 = scalar_lea.vmem (!%p104_p0), [#allocation2], %s259_s22 }
  0x33   : > { %389 = dma.done.wait (%p580_p6), %s110_s23, 128  }
  0x34   : > { %391 = vsyncadd (%p580_p6), %s110_s23, 4294967168  ;;  %v132_v0 = vld [vmem:[%s113_s24] sm:$0xff]  ;;  %s131_s17 = scalar_lea.vmem [#allocation5], %s259_s22  ;;  %s269_s26 = sshll.u32 %s445_s10, 7 }
  0x35   : > { %v261_v1 = vadd.f32 0.75854874, %v132_v0  ;;  %v262_v2 = vadd.f32 0.6949191, %v132_v0  ;;  %v263_v3 = vadd.f32 0.6352427, %v132_v0  ;;  %s181_s29 = scalar_lea.hbm %s570_s1, %s269_s26 }
  0x36   : > { %v264_v4 = vadd.f32 0.61637306, %v132_v0  ;;  %v265_v5 = vadd.f32 0.5456438, %v132_v0  ;;  %v266_v6 = vadd.f32 -0.44403005, %v132_v0 }
  0x37   : > { %v134_v7 = vmul.f32 10.22662, %v261_v1  ;;  %v139_v8 = vmul.f32 -39.0916, %v262_v2  ;;  %v144_v9 = vmul.f32 67.50031, %v263_v3 }
  0x38   : > { %v149_v10 = vmul.f32 13.679181, %v264_v4  ;;  %v154_v11 = vmul.f32 -1.3985375, %v265_v5  ;;  %v267_v15 = vadd.f32 -0.5308912, %v132_v0 }
  0x39   : > { %v135_v12 = vmax.f32 %v134_v7, 0.0  ;;  %v140_v13 = vmax.f32 %v139_v8, -2.3328464  ;;  %v145_v14 = vmax.f32 %v144_v9, 0.0  ;;  %v159_v19 = vmul.f32 0.34920344, %v266_v6 }
  0x3a   : > { %v150_v18 = vmax.f32 %v149_v10, 0.0  ;;  %v155_v20 = vmax.f32 %v154_v11, -1.384096  ;;  %v164_v23 = vmul.f32 -8.418505, %v267_v15  ;;  %s183_s25 = sshll.u32 %s131_s17, 4  ;;  %s184_s25 = int_to_ptr.vmem [resolvable:$true] %s183_s25 }
  0x3b   : > { %v136_v16 = vmin.f32 %v135_v12, 0.65071595  ;;  %v141_v17 = vmin.f32 %v140_v13, 0.0  ;;  %v146_v22 = vmin.f32 %v145_v14, 1.2737064  ;;  %v160_v26 = vmax.f32 %v159_v19, 0.0 }
  0x3c   : > { %v151_v25 = vmin.f32 %v150_v18, 0.96751827  ;;  %v156_v28 = vmin.f32 %v155_v20, 0.0  ;;  %v165_v29 = vmax.f32 %v164_v23, -1.2942362  ;;  %s170_s30 = scalar_lea.sflag [#allocation4], %s522_s21 }
  0x3d   : > { %v137_v21 = vadd.f32 -0.3535502, %v136_v16  ;;  %v161_v31 = vmin.f32 %v160_v26, 0.030332208  ;;  %s346_s2 = scalar_lea.vmem %s184_s25, 128  ;;  %p581_p12 = scmp.ne.s32.totalorder %s575_s18, 0 }
  0x3e   : > { %v166_v33 = vmin.f32 %v165_v29, 0.0  ;;  %p347_p11 = scmp.ne.s32.totalorder %s184_s25, %s346_s2  ;;  %s413_s3 = smov [#allocation5]  }
  0x3f   : > { %v142_v24 = vadd.f32 %v141_v17, %v137_v21  ;;  %s350_s4 = sshll.u32 %s413_s3, 4  ;;  %s351_s4 = int_to_ptr.vmem [resolvable:$false] %s350_s4 }
  0x40   : > { %p348_p13 = pnand %p347_p11, %p581_p12  ;;  %s352_s5 = scalar_lea.vmem %s351_s4, 256 }
  0x41   : > { %v147_v27 = vadd.f32 %v146_v22, %v142_v24  ;;  %p353_p3 = scmp.lt.s32.totalorder %s184_s25, %s351_s4  ;;  %p354_p5 = scmp.lt.s32.totalorder %s352_s5, %s346_s2 }
  0x42   : > { %p349_p1 = pneg %p348_p13 }
  0x43   : > { %v152_v30 = vadd.f32 %v151_v25, %v147_v27  ;;  %p355_p8 = por %p354_p5, %p353_p3 }
  0x45   : > { %v157_v32 = vadd.f32 %v156_v28, %v152_v30  ;;  %p356_p10 = pnand %p355_p8, %p349_p1 }
  0x47   : > { %v162_v34 = vadd.f32 %v161_v31, %v157_v32 }
  0x49   : > { %v167_v35 = vadd.f32 %v166_v33, %v162_v34 }
  0x4b   : > { %168 = vst [vmem:[%s131_s17] sm:$0xff] %v167_v35 }
  0x4c   : > { %359 = shalt.err (!%p356_p10)
}
  0x4d   : > { %s360_s10 = scalar_lea.hbm %s181_s29, 128  ;;  %s364_s14 = scalar_lea.hbm %s570_s1, 256 }
  0x4e   : > { %p361_p2 = scmp.ne.s32.totalorder %s181_s29, %s360_s10  ;;  %p365_p7 = scmp.lt.s32.totalorder %s181_s29, %s570_s1 }
  0x4f   : > { %p366_p0 = scmp.lt.s32.totalorder %s364_s14, %s360_s10 }
  0x50   : > { %p362_p4 = pnand %p361_p2, %p581_p12 }
  0x51   : > { %p367_p6 = por %p366_p0, %p365_p7 }
  0x52   : > { %p363_p9 = pneg %p362_p4 }
  0x54   : > { %p368_p11 = pnand %p367_p6, %p363_p9 }
  0x56   : > { %371 = shalt.err (!%p368_p11)
}
  0x57   : > { %274 = dma.vmem_to_hbm [thread:$0]  (%p581_p12), %s184_s25, 128, %s181_s29, %s170_s30  }
  0x58 PF: > { %s195_s21 = sand.u32 1, %s398_s6   ;;  %p582_p13 = scmp.ne.s32.totalorder %s576_s19, 0 }
  0x59   : > { %p583_p1 = scmp.ge.s32.totalorder %s410_s9, 2  ;;  %s196_s22 = scalar_lea.sflag [#allocation4], %s195_s21 }
  0x5b   : > { %p281_p3 = pnand %p583_p1, %p582_p13 }
  0x5d   : > { %p282_p5 = pneg %p281_p3 }
  0x5f   : > { %393 = dma.done.wait (%p282_p5), %s196_s22, 128  }
  0x60   : > { %395 = vsyncadd (%p282_p5), %s196_s22, 4294967168  ;;  %p14_p8 = scmp.ge.s32.totalorder %s449_s12, 4   ;;  %s584_s6 = smov %s402_s7 }
  0x61   : > { %s585_s7 = smov %s406_s8  ;;  %s586_s8 = smov %s461_s15 }
  0x62   : > { %s587_s9 = smov %s449_s12  ;;  %16 = sbr.rel (!%p14_p8) target bundleno = 5 (0x5), region = 69 }
  0x67   :  { %201 = vsyncpa [#allocation3], 1 }
  0x68   :  { %203 = vsyncpa [#allocation3 + $0x1], 1 }
  0x69   :  { %204 = vsyncpa [#allocation4], 1 }
  0x6a   :  { %206 = vsyncpa [#allocation4 + $0x1], 1 }

</bundles_post_ra>
